<compile_context>
chip_gen: v7x
topology: tpu7x:2x2x1
jax: 0.10.0
libtpu: 0.0.40
codegen_flags: <defaults>
</compile_context>

<pallas_src>
import functools

import jax
import jax.numpy as jnp
from jax import lax
from jax.experimental import pallas as pl
from jax.experimental.pallas import tpu as pltpu


def _poly_cutoff(x):
    # PolynomialCutoff with p = 9:
    #   f(x) = 1 - (p+1)(p+2)/2 x^p + p(p+2) x^(p+1) - p(p+1)/2 x^(p+2),  x = D / cutoff
    # multiplied by (x < 1).
    p = 9.0
    c1 = (p + 1.0) * (p + 2.0) / 2.0   # 55
    c2 = p * (p + 2.0)                 # 99
    c3 = p * (p + 1.0) / 2.0           # 45
    x2 = x * x
    x4 = x2 * x2
    x8 = x4 * x4
    x9 = x8 * x
    env = 1.0 - c1 * x9 + c2 * x9 * x - c3 * x9 * x2
    return jnp.where(x < 1.0, env, 0.0)


def _mp_kernel(a_ref, rbf_ref, dnm_ref, n_ref, p_ref,
               w_rbf_ref, b_rbf_ref, w1_ref, b1_ref, w2_ref, b2_ref,
               a_out_ref, p_out_ref, ams_ref, *, cutoff):
    A = a_ref.shape[1]                       # full molecule atom count
    A_t, Nn = n_ref.shape[1], n_ref.shape[2] # atom tile, neighbor slots
    R, F = w_rbf_ref.shape

    t = pl.program_id(1)
    row0 = pl.multiple_of(t * A_t, A_t)

    # phi_a on the full molecule (needed as the gather source); stash in VMEM
    # scratch so the tile's own rows can be sliced dynamically.
    # TODO(synk): `activation` is a constructor arg in the PyTorch module; SiLU is assumed.
    a_full = a_ref[0]                                                        # (A, F)
    h = jnp.dot(a_full, w1_ref[...], preferred_element_type=jnp.float32) + b1_ref[...]
    h = h * jax.nn.sigmoid(h)                                                # SiLU
    a_msij = jnp.dot(h, w2_ref[...], preferred_element_type=jnp.float32) + b2_ref[...]
    ams_ref[...] = a_msij
    a_ms_tile = ams_ref[pl.ds(row0, A_t), :]                                 # (A_t, F) "ai"
    a_tile = a_ref[0, pl.ds(row0, A_t), :]                                   # (A_t, F) residual

    # Cutoff envelope with the neighbor mask folded in (single per-pair scale).
    dnm = dnm_ref[0]                                                         # (A_t, 2*Nn)
    env = _poly_cutoff(dnm[:, :Nn] * (1.0 / cutoff)) * dnm[:, Nn:]           # (A_t, Nn)

    rbf_all = rbf_ref[0]                                                     # (A_t, Nn*R)
    idx_all = n_ref[0]                                                       # (A_t, Nn) int32
    col = lax.broadcasted_iota(jnp.int32, (A_t, A), 1)                       # gather columns

    msij_parts = []
    nbr_sum = jnp.zeros((A_t, F), jnp.float32)
    for n in range(Nn):                                                      # static unroll
        # phi_rbf for slot n (MXU), scaled by (cutoff * mask).
        rbf_n = rbf_all[:, n * R:(n + 1) * R]                                # (A_t, R)
        rbf_ms = jnp.dot(rbf_n, w_rbf_ref[...],
                         preferred_element_type=jnp.float32) + b_rbf_ref[...]
        rbf_ms = rbf_ms * env[:, n:n + 1]                                    # (A_t, F)

        # Data-dependent gather of neighbor features: one-hot matmul on the MXU.
        # Note: out-of-range indices produce a zero row (reference clamps instead);
        # padded entries of N are assumed to stay inside [0, A).
        sel = (idx_all[:, n:n + 1] == col).astype(jnp.float32)               # (A_t, A)
        aj = jnp.dot(sel, a_msij, preferred_element_type=jnp.float32)        # (A_t, F)

        msij_n = a_ms_tile * aj * rbf_ms          # "ai" broadcast = value reuse (VPU only)
        nbr_sum = nbr_sum + msij_n                # neighbor-sum = plain VPU adds
        msij_parts.append(msij_n)

    a_out_ref[0] = a_tile + nbr_sum
    # Single lane-dense (A_t, Nn*F) store for the pairwise update.
    p_out_ref[0] = p_ref[0] + jnp.concatenate(msij_parts, axis=1)


def message_passing(a, p, rbf, D, N, NM, params, *, cutoff, a_tile=None):
    """Pallas implementation of MessagePassing.forward."""
    B, A, F = a.shape
    _, _, Nn, R = rbf.shape
    if a_tile is None:
        a_tile = A                       # size the atom tile to fit VMEM (~40-48 MiB on v7x)
    assert A % a_tile == 0 and (a_tile % 8 == 0 or a_tile == A)

    a_f = a.astype(jnp.float32)
    rbf_f = rbf.reshape(B, A, Nn * R).astype(jnp.float32)
    p_f = p.reshape(B, A, Nn * F).astype(jnp.float32)           # lane-dense pairwise layout
    dnm = jnp.concatenate([D, NM], axis=-1).astype(jnp.float32)  # (B, A, 2*Nn)
    n_f = N.astype(jnp.int32)                                    # (B, A, Nn)

    w_rbf, b_rbf, w1, b1, w2, b2 = params
    kernel = functools.partial(_mp_kernel, cutoff=float(cutoff))

    a_out, p_out = pl.pallas_call(
        kernel,
        out_shape=(
            jax.ShapeDtypeStruct((B, A, F), jnp.float32),
            jax.ShapeDtypeStruct((B, A, Nn * F), jnp.float32),
        ),
        grid_spec=pltpu.PrefetchScalarGridSpec(
            num_scalar_prefetch=0,
            grid=(B, A // a_tile),
            in_specs=[
                pl.BlockSpec((1, A, F), lambda b, t: (b, 0, 0)),            # a (full molecule)
                pl.BlockSpec((1, a_tile, Nn * R), lambda b, t: (b, t, 0)),  # rbf
                pl.BlockSpec((1, a_tile, 2 * Nn), lambda b, t: (b, t, 0)),  # [D | NM]
                pl.BlockSpec((1, a_tile, Nn), lambda b, t: (b, t, 0)),      # N (int32)
                pl.BlockSpec((1, a_tile, Nn * F), lambda b, t: (b, t, 0)),  # p (lane-dense)
                pl.BlockSpec((R, F), lambda b, t: (0, 0)),                  # w_rbf
                pl.BlockSpec((1, F), lambda b, t: (0, 0)),                  # b_rbf
                pl.BlockSpec((F, F), lambda b, t: (0, 0)),                  # w1
                pl.BlockSpec((1, F), lambda b, t: (0, 0)),                  # b1
                pl.BlockSpec((F, F), lambda b, t: (0, 0)),                  # w2
                pl.BlockSpec((1, F), lambda b, t: (0, 0)),                  # b2
            ],
            out_specs=[
                pl.BlockSpec((1, a_tile, F), lambda b, t: (b, t, 0)),       # a_out
                pl.BlockSpec((1, a_tile, Nn * F), lambda b, t: (b, t, 0)),  # p_out
            ],
            scratch_shapes=[pltpu.VMEM((A, F), jnp.float32)],               # phi_a(a) stash
        ),
        input_output_aliases={4: 1},    # p updated in place in HBM
        compiler_params=pltpu.CompilerParams(
            dimension_semantics=("parallel", "parallel"),
            vmem_limit_bytes=48 * 1024 * 1024),
    )(a_f, rbf_f, dnm, n_f, p_f, w_rbf, b_rbf, w1, b1, w2, b2)

    return a_out, p_out.reshape(B, A, Nn, F)


def message_passing_reference(a, p, rbf, D, N, NM, params, *, cutoff):
    """Pure-JAX reference mirroring the PyTorch forward."""
    w_rbf, b_rbf, w1, b1, w2, b2 = params
    B, A, F = a.shape
    Nn = rbf.shape[2]

    rbf_msij = rbf @ w_rbf + b_rbf[0]                              # [B,A,Nn,F]
    rbf_msij = rbf_msij * _poly_cutoff(D / cutoff)[..., None]

    h = a @ w1 + b1[0]
    h = h * jax.nn.sigmoid(h)
    a_msij = h @ w2 + b2[0]                                        # [B,A,F]

    ai_msij = jnp.broadcast_to(a_msij[:, :, None, :], (B, A, Nn, F))
    idx = N.reshape(B, A * Nn)
    aj_msij = jnp.take_along_axis(a_msij, idx[..., None], axis=1).reshape(B, A, Nn, F)

    msij = ai_msij * aj_msij * rbf_msij * NM[..., None]
    return a + msij.sum(axis=2), p + msij


if __name__ == "__main__":
    B, A, Nn, R, F = 2, 8, 4, 16, 32
    cutoff = 5.0

    key = jax.random.PRNGKey(0)
    keys = jax.random.split(key, 12)

    # Deterministic parameter init (Dense layers: Linear weight + bias).
    w_rbf = (jax.random.normal(keys[0], (R, F), jnp.float32) / jnp.sqrt(R))
    b_rbf = jax.random.normal(keys[1], (1, F), jnp.float32) * 0.01
    w1 = (jax.random.normal(keys[2], (F, F), jnp.float32) / jnp.sqrt(F))
    b1 = jax.random.normal(keys[3], (1, F), jnp.float32) * 0.01
    w2 = (jax.random.normal(keys[4], (F, F), jnp.float32) / jnp.sqrt(F))
    b2 = jax.random.normal(keys[5], (1, F), jnp.float32) * 0.01
    params = (w_rbf, b_rbf, w1, b1, w2, b2)

    # Inputs.
    a = jax.random.normal(keys[6], (B, A, F), jnp.float32)
    p = jax.random.normal(keys[7], (B, A, Nn, F), jnp.float32)
    rbf = jax.random.normal(keys[8], (B, A, Nn, R), jnp.float32)
    D = jax.random.uniform(keys[9], (B, A, Nn), jnp.float32, 0.5, 1.3 * cutoff)
    N = jax.random.randint(keys[10], (B, A, Nn), 0, A, jnp.int32)
    NM = jax.random.bernoulli(keys[11], 0.8, (B, A, Nn)).astype(jnp.float32)

    a_out, p_out = message_passing(a, p, rbf, D, N, NM, params, cutoff=cutoff)
    a_out = jax.block_until_ready(a_out)
    p_out = jax.block_until_ready(p_out)

    a_ref, p_ref = message_passing_reference(a, p, rbf, D, N, NM, params, cutoff=cutoff)

    assert a_out.shape == (B, A, F) and p_out.shape == (B, A, Nn, F)
    assert bool(jnp.all(jnp.isfinite(a_out))) and bool(jnp.all(jnp.isfinite(p_out)))
    assert bool(jnp.allclose(a_out, a_ref, rtol=1e-4, atol=1e-4))
    assert bool(jnp.allclose(p_out, p_ref, rtol=1e-4, atol=1e-4))

    print("KERNEL_OK")
</pallas_src>

<mosaic_0001>
module attributes {stable_mosaic.version = 11 : i64} {
  func.func @_mp_kernel(%arg0: i32, %arg1: i32, %arg2: memref<1x8x32xf32, #tpu.memory_space<vmem>>, %arg3: memref<1x8x64xf32, #tpu.memory_space<vmem>>, %arg4: memref<1x8x8xf32, #tpu.memory_space<vmem>>, %arg5: memref<1x8x4xi32, #tpu.memory_space<vmem>>, %arg6: memref<1x8x128xf32, #tpu.memory_space<vmem>>, %arg7: memref<16x32xf32, #tpu.memory_space<vmem>>, %arg8: memref<1x32xf32, #tpu.memory_space<vmem>>, %arg9: memref<32x32xf32, #tpu.memory_space<vmem>>, %arg10: memref<1x32xf32, #tpu.memory_space<vmem>>, %arg11: memref<32x32xf32, #tpu.memory_space<vmem>>, %arg12: memref<1x32xf32, #tpu.memory_space<vmem>>, %arg13: memref<1x8x32xf32, #tpu.memory_space<vmem>>, %arg14: memref<1x8x128xf32, #tpu.memory_space<vmem>>, %arg15: memref<8x32xf32, #tpu.memory_space<vmem>>) attributes {dimension_semantics = [#tpu.dimension_semantics<parallel>, #tpu.dimension_semantics<parallel>], iteration_bounds = array<i64: 2, 1>, scalar_prefetch = 0 : i64, scratch_operands = 1 : i64, tpu.core_type = #tpu.core_type<tc>, window_params = [{transform_indices = @transform_0, window_bounds = array<i64: 1, 8, 32>}, {transform_indices = @transform_1, window_bounds = array<i64: 1, 8, 64>}, {transform_indices = @transform_2, window_bounds = array<i64: 1, 8, 8>}, {transform_indices = @transform_3, window_bounds = array<i64: 1, 8, 4>}, {transform_indices = @transform_4, window_bounds = array<i64: 1, 8, 128>}, {pipeline_mode = #tpu.pipeline_mode<synchronous>, transform_indices = @transform_5, window_bounds = array<i64: 16, 32>}, {pipeline_mode = #tpu.pipeline_mode<synchronous>, transform_indices = @transform_6, window_bounds = array<i64: 1, 32>}, {pipeline_mode = #tpu.pipeline_mode<synchronous>, transform_indices = @transform_7, window_bounds = array<i64: 32, 32>}, {pipeline_mode = #tpu.pipeline_mode<synchronous>, transform_indices = @transform_8, window_bounds = array<i64: 1, 32>}, {pipeline_mode = #tpu.pipeline_mode<synchronous>, transform_indices = @transform_9, window_bounds = array<i64: 32, 32>}, {pipeline_mode = #tpu.pipeline_mode<synchronous>, transform_indices = @transform_10, window_bounds = array<i64: 1, 32>}, {transform_indices = @transform_11, window_bounds = array<i64: 1, 8, 32>}, {transform_indices = @transform_12, window_bounds = array<i64: 1, 8, 128>}]} {
    %c8_i32 = arith.constant 8 : i32
    %0 = arith.muli %arg1, %c8_i32 : i32
    %1 = tpu.assume_multiple %0, 8 : i32
    %c0 = arith.constant 0 : index
    %c0_0 = arith.constant 0 : index
    %c0_1 = arith.constant 0 : index
    %2 = vector.load %arg2[%c0, %c0_0, %c0_1] : memref<1x8x32xf32, #tpu.memory_space<vmem>>, vector<1x8x32xf32>
    %3 = vector.shape_cast %2 : vector<1x8x32xf32> to vector<8x32xf32>
    %c0_2 = arith.constant 0 : index
    %c0_3 = arith.constant 0 : index
    %4 = vector.load %arg9[%c0_2, %c0_3] : memref<32x32xf32, #tpu.memory_space<vmem>>, vector<32x32xf32>
    %cst = arith.constant dense<0.000000e+00> : vector<8x32xf32>
    %5 = tpu.matmul %3, %4, %cst {dimension_numbers = #tpu.dot_dimension_numbers<[1], [0], [0], [1], [0, 0, 1, 1], [], []>} : vector<8x32xf32>, vector<32x32xf32>, vector<8x32xf32> -> vector<8x32xf32>
    %c0_4 = arith.constant 0 : index
    %c0_5 = arith.constant 0 : index
    %6 = vector.load %arg10[%c0_4, %c0_5] : memref<1x32xf32, #tpu.memory_space<vmem>>, vector<1x32xf32>
    %7 = vector.broadcast %6 : vector<1x32xf32> to vector<8x32xf32>
    %8 = arith.addf %5, %7 : vector<8x32xf32>
    %9 = arith.negf %8 : vector<8x32xf32>
    %10 = math.exp %9 : vector<8x32xf32>
    %cst_6 = arith.constant 1.000000e+00 : f32
    %11 = vector.broadcast %cst_6 : f32 to vector<8x32xf32>
    %12 = arith.addf %11, %10 : vector<8x32xf32>
    %13 = arith.divf %11, %12 : vector<8x32xf32>
    %14 = arith.mulf %8, %13 : vector<8x32xf32>
    %c0_7 = arith.constant 0 : index
    %c0_8 = arith.constant 0 : index
    %15 = vector.load %arg11[%c0_7, %c0_8] : memref<32x32xf32, #tpu.memory_space<vmem>>, vector<32x32xf32>
    %cst_9 = arith.constant dense<0.000000e+00> : vector<8x32xf32>
    %16 = tpu.matmul %14, %15, %cst_9 {dimension_numbers = #tpu.dot_dimension_numbers<[1], [0], [0], [1], [0, 0, 1, 1], [], []>} : vector<8x32xf32>, vector<32x32xf32>, vector<8x32xf32> -> vector<8x32xf32>
    %c0_10 = arith.constant 0 : index
    %c0_11 = arith.constant 0 : index
    %17 = vector.load %arg12[%c0_10, %c0_11] : memref<1x32xf32, #tpu.memory_space<vmem>>, vector<1x32xf32>
    %18 = vector.broadcast %17 : vector<1x32xf32> to vector<8x32xf32>
    %19 = arith.addf %16, %18 : vector<8x32xf32>
    %c0_12 = arith.constant 0 : index
    %c0_13 = arith.constant 0 : index
    %20 = vector.load %arg15[%c0_12, %c0_13] : memref<8x32xf32, #tpu.memory_space<vmem>>, vector<8x32xf32>
    tpu.vector_store %arg15[%c0_12, %c0_13], %19 {strides = array<i32>} : memref<8x32xf32, #tpu.memory_space<vmem>>, vector<8x32xf32>,
    %21 = arith.index_cast %1 : i32 to index
    %c0_14 = arith.constant 0 : index
    %22 = vector.load %arg15[%21, %c0_14] : memref<8x32xf32, #tpu.memory_space<vmem>>, vector<8x32xf32>
    %c0_15 = arith.constant 0 : index
    %23 = arith.index_cast %1 : i32 to index
    %c0_16 = arith.constant 0 : index
    %24 = vector.load %arg2[%c0_15, %23, %c0_16] : memref<1x8x32xf32, #tpu.memory_space<vmem>>, vector<1x8x32xf32>
    %25 = vector.shape_cast %24 : vector<1x8x32xf32> to vector<8x32xf32>
    %c0_17 = arith.constant 0 : index
    %c0_18 = arith.constant 0 : index
    %c0_19 = arith.constant 0 : index
    %26 = vector.load %arg4[%c0_17, %c0_18, %c0_19] : memref<1x8x8xf32, #tpu.memory_space<vmem>>, vector<1x8x8xf32>
    %27 = vector.shape_cast %26 : vector<1x8x8xf32> to vector<8x8xf32>
    %28 = vector.extract_strided_slice %27 {offsets = [0, 0], sizes = [8, 4], strides = [1, 1]} : vector<8x8xf32> to vector<8x4xf32>
    %cst_20 = arith.constant 2.000000e-01 : f32
    %29 = vector.broadcast %cst_20 : f32 to vector<8x4xf32>
    %30 = arith.mulf %28, %29 : vector<8x4xf32>
    %31 = arith.mulf %30, %30 : vector<8x4xf32>
    %32 = arith.mulf %31, %31 : vector<8x4xf32>
    %33 = arith.mulf %32, %32 : vector<8x4xf32>
    %34 = arith.mulf %33, %30 : vector<8x4xf32>
    %cst_21 = arith.constant 5.500000e+01 : f32
    %35 = vector.broadcast %cst_21 : f32 to vector<8x4xf32>
    %36 = arith.mulf %35, %34 : vector<8x4xf32>
    %cst_22 = arith.constant 1.000000e+00 : f32
    %37 = vector.broadcast %cst_22 : f32 to vector<8x4xf32>
    %38 = arith.subf %37, %36 : vector<8x4xf32>
    %cst_23 = arith.constant 9.900000e+01 : f32
    %39 = vector.broadcast %cst_23 : f32 to vector<8x4xf32>
    %40 = arith.mulf %39, %34 : vector<8x4xf32>
    %41 = arith.mulf %40, %30 : vector<8x4xf32>
    %42 = arith.addf %38, %41 : vector<8x4xf32>
    %cst_24 = arith.constant 4.500000e+01 : f32
    %43 = vector.broadcast %cst_24 : f32 to vector<8x4xf32>
    %44 = arith.mulf %43, %34 : vector<8x4xf32>
    %45 = arith.mulf %44, %31 : vector<8x4xf32>
    %46 = arith.subf %42, %45 : vector<8x4xf32>
    %cst_25 = arith.constant 1.000000e+00 : f32
    %47 = vector.broadcast %cst_25 : f32 to vector<8x4xf32>
    %48 = arith.cmpf olt, %30, %47 : vector<8x4xf32>
    %cst_26 = arith.constant 0.000000e+00 : f32
    %49 = vector.broadcast %cst_26 : f32 to vector<8x4xf32>
    %50 = arith.select %48, %46, %49 : vector<8x4xi1>, vector<8x4xf32>
    %51 = vector.extract_strided_slice %27 {offsets = [0, 4], sizes = [8, 4], strides = [1, 1]} : vector<8x8xf32> to vector<8x4xf32>
    %52 = arith.mulf %50, %51 : vector<8x4xf32>
    %c0_27 = arith.constant 0 : index
    %c0_28 = arith.constant 0 : index
    %c0_29 = arith.constant 0 : index
    %53 = vector.load %arg3[%c0_27, %c0_28, %c0_29] : memref<1x8x64xf32, #tpu.memory_space<vmem>>, vector<1x8x64xf32>
    %54 = vector.shape_cast %53 : vector<1x8x64xf32> to vector<8x64xf32>
    %c0_30 = arith.constant 0 : index
    %c0_31 = arith.constant 0 : index
    %c0_32 = arith.constant 0 : index
    %55 = vector.load %arg5[%c0_30, %c0_31, %c0_32] : memref<1x8x4xi32, #tpu.memory_space<vmem>>, vector<1x8x4xi32>
    %56 = vector.shape_cast %55 : vector<1x8x4xi32> to vector<8x4xi32>
    %57 = tpu.iota {dimensions = array<i32: 1>} : vector<8x8xi32>
    %cst_33 = arith.constant 0.000000e+00 : f32
    %58 = vector.broadcast %cst_33 : f32 to vector<8x32xf32>
    %59 = vector.extract_strided_slice %54 {offsets = [0, 0], sizes = [8, 16], strides = [1, 1]} : vector<8x64xf32> to vector<8x16xf32>
    %c0_34 = arith.constant 0 : index
    %c0_35 = arith.constant 0 : index
    %60 = vector.load %arg7[%c0_34, %c0_35] : memref<16x32xf32, #tpu.memory_space<vmem>>, vector<16x32xf32>
    %cst_36 = arith.constant dense<0.000000e+00> : vector<8x32xf32>
    %61 = tpu.matmul %59, %60, %cst_36 {dimension_numbers = #tpu.dot_dimension_numbers<[1], [0], [0], [1], [0, 0, 1, 1], [], []>} : vector<8x16xf32>, vector<16x32xf32>, vector<8x32xf32> -> vector<8x32xf32>
    %c0_37 = arith.constant 0 : index
    %c0_38 = arith.constant 0 : index
    %62 = vector.load %arg8[%c0_37, %c0_38] : memref<1x32xf32, #tpu.memory_space<vmem>>, vector<1x32xf32>
    %63 = vector.broadcast %62 : vector<1x32xf32> to vector<8x32xf32>
    %64 = arith.addf %61, %63 : vector<8x32xf32>
    %65 = vector.extract_strided_slice %52 {offsets = [0, 0], sizes = [8, 1], strides = [1, 1]} : vector<8x4xf32> to vector<8x1xf32>
    %66 = vector.broadcast %65 : vector<8x1xf32> to vector<8x32xf32>
    %67 = arith.mulf %64, %66 : vector<8x32xf32>
    %68 = vector.extract_strided_slice %56 {offsets = [0, 0], sizes = [8, 1], strides = [1, 1]} : vector<8x4xi32> to vector<8x1xi32>
    %69 = vector.broadcast %68 : vector<8x1xi32> to vector<8x8xi32>
    %70 = arith.cmpi eq, %69, %57 : vector<8x8xi32>
    %71 = arith.extui %70 : vector<8x8xi1> to vector<8x8xi32>
    %72 = arith.sitofp %71 : vector<8x8xi32> to vector<8x8xf32>
    %cst_39 = arith.constant dense<0.000000e+00> : vector<8x32xf32>
    %73 = tpu.matmul %72, %19, %cst_39 {dimension_numbers = #tpu.dot_dimension_numbers<[1], [0], [0], [1], [0, 0, 1, 1], [], []>} : vector<8x8xf32>, vector<8x32xf32>, vector<8x32xf32> -> vector<8x32xf32>
    %74 = arith.mulf %22, %73 : vector<8x32xf32>
    %75 = arith.mulf %74, %67 : vector<8x32xf32>
    %76 = arith.addf %58, %75 : vector<8x32xf32>
    %77 = vector.extract_strided_slice %54 {offsets = [0, 16], sizes = [8, 16], strides = [1, 1]} : vector<8x64xf32> to vector<8x16xf32>
    %c0_40 = arith.constant 0 : index
    %c0_41 = arith.constant 0 : index
    %78 = vector.load %arg7[%c0_40, %c0_41] : memref<16x32xf32, #tpu.memory_space<vmem>>, vector<16x32xf32>
    %cst_42 = arith.constant dense<0.000000e+00> : vector<8x32xf32>
    %79 = tpu.matmul %77, %78, %cst_42 {dimension_numbers = #tpu.dot_dimension_numbers<[1], [0], [0], [1], [0, 0, 1, 1], [], []>} : vector<8x16xf32>, vector<16x32xf32>, vector<8x32xf32> -> vector<8x32xf32>
    %c0_43 = arith.constant 0 : index
    %c0_44 = arith.constant 0 : index
    %80 = vector.load %arg8[%c0_43, %c0_44] : memref<1x32xf32, #tpu.memory_space<vmem>>, vector<1x32xf32>
    %81 = vector.broadcast %80 : vector<1x32xf32> to vector<8x32xf32>
    %82 = arith.addf %79, %81 : vector<8x32xf32>
    %83 = vector.extract_strided_slice %52 {offsets = [0, 1], sizes = [8, 1], strides = [1, 1]} : vector<8x4xf32> to vector<8x1xf32>
    %84 = vector.broadcast %83 : vector<8x1xf32> to vector<8x32xf32>
    %85 = arith.mulf %82, %84 : vector<8x32xf32>
    %86 = vector.extract_strided_slice %56 {offsets = [0, 1], sizes = [8, 1], strides = [1, 1]} : vector<8x4xi32> to vector<8x1xi32>
    %87 = vector.broadcast %86 : vector<8x1xi32> to vector<8x8xi32>
    %88 = arith.cmpi eq, %87, %57 : vector<8x8xi32>
    %89 = arith.extui %88 : vector<8x8xi1> to vector<8x8xi32>
    %90 = arith.sitofp %89 : vector<8x8xi32> to vector<8x8xf32>
    %cst_45 = arith.constant dense<0.000000e+00> : vector<8x32xf32>
    %91 = tpu.matmul %90, %19, %cst_45 {dimension_numbers = #tpu.dot_dimension_numbers<[1], [0], [0], [1], [0, 0, 1, 1], [], []>} : vector<8x8xf32>, vector<8x32xf32>, vector<8x32xf32> -> vector<8x32xf32>
    %92 = arith.mulf %22, %91 : vector<8x32xf32>
    %93 = arith.mulf %92, %85 : vector<8x32xf32>
    %94 = arith.addf %76, %93 : vector<8x32xf32>
    %95 = vector.extract_strided_slice %54 {offsets = [0, 32], sizes = [8, 16], strides = [1, 1]} : vector<8x64xf32> to vector<8x16xf32>
    %c0_46 = arith.constant 0 : index
    %c0_47 = arith.constant 0 : index
    %96 = vector.load %arg7[%c0_46, %c0_47] : memref<16x32xf32, #tpu.memory_space<vmem>>, vector<16x32xf32>
    %cst_48 = arith.constant dense<0.000000e+00> : vector<8x32xf32>
    %97 = tpu.matmul %95, %96, %cst_48 {dimension_numbers = #tpu.dot_dimension_numbers<[1], [0], [0], [1], [0, 0, 1, 1], [], []>} : vector<8x16xf32>, vector<16x32xf32>, vector<8x32xf32> -> vector<8x32xf32>
    %c0_49 = arith.constant 0 : index
    %c0_50 = arith.constant 0 : index
    %98 = vector.load %arg8[%c0_49, %c0_50] : memref<1x32xf32, #tpu.memory_space<vmem>>, vector<1x32xf32>
    %99 = vector.broadcast %98 : vector<1x32xf32> to vector<8x32xf32>
    %100 = arith.addf %97, %99 : vector<8x32xf32>
    %101 = vector.extract_strided_slice %52 {offsets = [0, 2], sizes = [8, 1], strides = [1, 1]} : vector<8x4xf32> to vector<8x1xf32>
    %102 = vector.broadcast %101 : vector<8x1xf32> to vector<8x32xf32>
    %103 = arith.mulf %100, %102 : vector<8x32xf32>
    %104 = vector.extract_strided_slice %56 {offsets = [0, 2], sizes = [8, 1], strides = [1, 1]} : vector<8x4xi32> to vector<8x1xi32>
    %105 = vector.broadcast %104 : vector<8x1xi32> to vector<8x8xi32>
    %106 = arith.cmpi eq, %105, %57 : vector<8x8xi32>
    %107 = arith.extui %106 : vector<8x8xi1> to vector<8x8xi32>
    %108 = arith.sitofp %107 : vector<8x8xi32> to vector<8x8xf32>
    %cst_51 = arith.constant dense<0.000000e+00> : vector<8x32xf32>
    %109 = tpu.matmul %108, %19, %cst_51 {dimension_numbers = #tpu.dot_dimension_numbers<[1], [0], [0], [1], [0, 0, 1, 1], [], []>} : vector<8x8xf32>, vector<8x32xf32>, vector<8x32xf32> -> vector<8x32xf32>
    %110 = arith.mulf %22, %109 : vector<8x32xf32>
    %111 = arith.mulf %110, %103 : vector<8x32xf32>
    %112 = arith.addf %94, %111 : vector<8x32xf32>
    %113 = vector.extract_strided_slice %54 {offsets = [0, 48], sizes = [8, 16], strides = [1, 1]} : vector<8x64xf32> to vector<8x16xf32>
    %c0_52 = arith.constant 0 : index
    %c0_53 = arith.constant 0 : index
    %114 = vector.load %arg7[%c0_52, %c0_53] : memref<16x32xf32, #tpu.memory_space<vmem>>, vector<16x32xf32>
    %cst_54 = arith.constant dense<0.000000e+00> : vector<8x32xf32>
    %115 = tpu.matmul %113, %114, %cst_54 {dimension_numbers = #tpu.dot_dimension_numbers<[1], [0], [0], [1], [0, 0, 1, 1], [], []>} : vector<8x16xf32>, vector<16x32xf32>, vector<8x32xf32> -> vector<8x32xf32>
    %c0_55 = arith.constant 0 : index
    %c0_56 = arith.constant 0 : index
    %116 = vector.load %arg8[%c0_55, %c0_56] : memref<1x32xf32, #tpu.memory_space<vmem>>, vector<1x32xf32>
    %117 = vector.broadcast %116 : vector<1x32xf32> to vector<8x32xf32>
    %118 = arith.addf %115, %117 : vector<8x32xf32>
    %119 = vector.extract_strided_slice %52 {offsets = [0, 3], sizes = [8, 1], strides = [1, 1]} : vector<8x4xf32> to vector<8x1xf32>
    %120 = vector.broadcast %119 : vector<8x1xf32> to vector<8x32xf32>
    %121 = arith.mulf %118, %120 : vector<8x32xf32>
    %122 = vector.extract_strided_slice %56 {offsets = [0, 3], sizes = [8, 1], strides = [1, 1]} : vector<8x4xi32> to vector<8x1xi32>
    %123 = vector.broadcast %122 : vector<8x1xi32> to vector<8x8xi32>
    %124 = arith.cmpi eq, %123, %57 : vector<8x8xi32>
    %125 = arith.extui %124 : vector<8x8xi1> to vector<8x8xi32>
    %126 = arith.sitofp %125 : vector<8x8xi32> to vector<8x8xf32>
    %cst_57 = arith.constant dense<0.000000e+00> : vector<8x32xf32>
    %127 = tpu.matmul %126, %19, %cst_57 {dimension_numbers = #tpu.dot_dimension_numbers<[1], [0], [0], [1], [0, 0, 1, 1], [], []>} : vector<8x8xf32>, vector<8x32xf32>, vector<8x32xf32> -> vector<8x32xf32>
    %128 = arith.mulf %22, %127 : vector<8x32xf32>
    %129 = arith.mulf %128, %121 : vector<8x32xf32>
    %130 = arith.addf %112, %129 : vector<8x32xf32>
    %131 = arith.addf %25, %130 : vector<8x32xf32>
    %c0_58 = arith.constant 0 : index
    %c0_59 = arith.constant 0 : index
    %c0_60 = arith.constant 0 : index
    %132 = vector.load %arg13[%c0_58, %c0_59, %c0_60] : memref<1x8x32xf32, #tpu.memory_space<vmem>>, vector<1x8x32xf32>
    %133 = vector.shape_cast %132 : vector<1x8x32xf32> to vector<8x32xf32>
    %134 = vector.shape_cast %131 : vector<8x32xf32> to vector<1x8x32xf32>
    tpu.vector_store %arg13[%c0_58, %c0_59, %c0_60], %134 {strides = array<i32>} : memref<1x8x32xf32, #tpu.memory_space<vmem>>, vector<1x8x32xf32>,
    %c0_61 = arith.constant 0 : index
    %c0_62 = arith.constant 0 : index
    %c0_63 = arith.constant 0 : index
    %135 = vector.load %arg6[%c0_61, %c0_62, %c0_63] : memref<1x8x128xf32, #tpu.memory_space<vmem>>, vector<1x8x128xf32>
    %136 = vector.shape_cast %135 : vector<1x8x128xf32> to vector<8x128xf32>
    %137 = tpu.concatenate %75, %93, %111, %129 in 1 : vector<8x32xf32>, vector<8x32xf32>, vector<8x32xf32>, vector<8x32xf32> -> vector<8x128xf32>
    %138 = arith.addf %136, %137 : vector<8x128xf32>
    %c0_64 = arith.constant 0 : index
    %c0_65 = arith.constant 0 : index
    %c0_66 = arith.constant 0 : index
    %139 = vector.load %arg14[%c0_64, %c0_65, %c0_66] : memref<1x8x128xf32, #tpu.memory_space<vmem>>, vector<1x8x128xf32>
    %140 = vector.shape_cast %139 : vector<1x8x128xf32> to vector<8x128xf32>
    %141 = vector.shape_cast %138 : vector<8x128xf32> to vector<1x8x128xf32>
    tpu.vector_store %arg14[%c0_64, %c0_65, %c0_66], %141 {strides = array<i32>} : memref<1x8x128xf32, #tpu.memory_space<vmem>>, vector<1x8x128xf32>,
    return
  }
  func.func @transform_0(%arg0: i32, %arg1: i32) -> (i32, i32, i32) {
    %c0_i32 = arith.constant 0 : i32
    %c0_i32_0 = arith.constant 0 : i32
    %c0_i32_1 = arith.constant 0 : i32
    return %arg0, %c0_i32, %c0_i32_0 : i32, i32, i32
  }
  func.func @transform_1(%arg0: i32, %arg1: i32) -> (i32, i32, i32) {
    %c0_i32 = arith.constant 0 : i32
    %c0_i32_0 = arith.constant 0 : i32
    return %arg0, %arg1, %c0_i32 : i32, i32, i32
  }
  func.func @transform_2(%arg0: i32, %arg1: i32) -> (i32, i32, i32) {
    %c0_i32 = arith.constant 0 : i32
    %c0_i32_0 = arith.constant 0 : i32
    return %arg0, %arg1, %c0_i32 : i32, i32, i32
  }
  func.func @transform_3(%arg0: i32, %arg1: i32) -> (i32, i32, i32) {
    %c0_i32 = arith.constant 0 : i32
    %c0_i32_0 = arith.constant 0 : i32
    return %arg0, %arg1, %c0_i32 : i32, i32, i32
  }
  func.func @transform_4(%arg0: i32, %arg1: i32) -> (i32, i32, i32) {
    %c0_i32 = arith.constant 0 : i32
    %c0_i32_0 = arith.constant 0 : i32
    return %arg0, %arg1, %c0_i32 : i32, i32, i32
  }
  func.func @transform_5(%arg0: i32, %arg1: i32) -> (i32, i32) {
    %c0_i32 = arith.constant 0 : i32
    %c0_i32_0 = arith.constant 0 : i32
    %c0_i32_1 = arith.constant 0 : i32
    return %c0_i32, %c0_i32_0 : i32, i32
  }
  func.func @transform_6(%arg0: i32, %arg1: i32) -> (i32, i32) {
    %c0_i32 = arith.constant 0 : i32
    %c0_i32_0 = arith.constant 0 : i32
    %c0_i32_1 = arith.constant 0 : i32
    return %c0_i32, %c0_i32_0 : i32, i32
  }
  func.func @transform_7(%arg0: i32, %arg1: i32) -> (i32, i32) {
    %c0_i32 = arith.constant 0 : i32
    %c0_i32_0 = arith.constant 0 : i32
    %c0_i32_1 = arith.constant 0 : i32
    return %c0_i32, %c0_i32_0 : i32, i32
  }
  func.func @transform_8(%arg0: i32, %arg1: i32) -> (i32, i32) {
    %c0_i32 = arith.constant 0 : i32
    %c0_i32_0 = arith.constant 0 : i32
    %c0_i32_1 = arith.constant 0 : i32
    return %c0_i32, %c0_i32_0 : i32, i32
  }
  func.func @transform_9(%arg0: i32, %arg1: i32) -> (i32, i32) {
    %c0_i32 = arith.constant 0 : i32
    %c0_i32_0 = arith.constant 0 : i32
    %c0_i32_1 = arith.constant 0 : i32
    return %c0_i32, %c0_i32_0 : i32, i32
  }
  func.func @transform_10(%arg0: i32, %arg1: i32) -> (i32, i32) {
    %c0_i32 = arith.constant 0 : i32
    %c0_i32_0 = arith.constant 0 : i32
    %c0_i32_1 = arith.constant 0 : i32
    return %c0_i32, %c0_i32_0 : i32, i32
  }
  func.func @transform_11(%arg0: i32, %arg1: i32) -> (i32, i32, i32) {
    %c0_i32 = arith.constant 0 : i32
    %c0_i32_0 = arith.constant 0 : i32
    return %arg0, %arg1, %c0_i32 : i32, i32, i32
  }
  func.func @transform_12(%arg0: i32, %arg1: i32) -> (i32, i32, i32) {
    %c0_i32 = arith.constant 0 : i32
    %c0_i32_0 = arith.constant 0 : i32
    return %arg0, %arg1, %c0_i32 : i32, i32, i32
  }
}

</mosaic_0001>

<bundles_post_ra>
// kernel: tpu_custom_call.1
= control target key start
LH: loop header
LB: loop body
LE: loop exit
PB: predicated region body
PF: predicated region fallthrough
CT: control target
= control target key end

     0   :  { %s2860_s0 = inlined_call_operand.vmem [shape: f32[2,8,32], index: 0, kind: input, shape index: {}]   ;;  %s2861_s1 = inlined_call_operand.vmem [shape: f32[2,8,64], index: 1, kind: input, shape index: {}]   ;;  %s2862_s2 = inlined_call_operand.hbm [shape: f32[2,8,8], index: 2, kind: input, shape index: {}]   ;;  %s2863_s3 = inlined_call_operand.vmem [shape: s32[2,8,4], index: 3, kind: input, shape index: {}]   ;;  %s2864_s4 = inlined_call_operand.hbm [shape: f32[2,8,128], index: 4, kind: input, shape index: {}, may-alias: {4,12}]   ;;  %s2865_s5 = inlined_call_operand.hbm [shape: f32[16,32], index: 5, kind: input, shape index: {}]   ;;  %s2866_s6 = inlined_call_operand.vmem [shape: f32[1,32], index: 6, kind: input, shape index: {}]   ;;  %s2867_s7 = inlined_call_operand.vmem [shape: f32[32,32], index: 7, kind: input, shape index: {}]   ;;  %s2868_s8 = inlined_call_operand.vmem [shape: f32[1,32], index: 8, kind: input, shape index: {}]   ;;  %s2869_s9 = inlined_call_operand.hbm [shape: f32[32,32], index: 9, kind: input, shape index: {}]   ;;  %s2870_s10 = inlined_call_operand.hbm [shape: f32[1,32], index: 10, kind: input, shape index: {}]   ;;  %s2871_s11 = inlined_call_operand.hbm [shape: f32[2,8,32], index: 11, kind: output, shape index: {0}]   ;;  %s2872_s12 = inlined_call_operand.hbm [shape: f32[2,8,128], index: 12, kind: output, shape index: {1}, may-alias: {4,12}]  }
   0x1   :  { %2881 = sst [smem:[#allocation23_spill]] %s2861_s1 }
   0x2   :  { %2882 = sst [smem:[#allocation24_spill]] %s2863_s3 }
   0x3   :  { %2883 = sst [smem:[#allocation25_spill]] %s2865_s5 }
   0x4   :  { %2884 = sst [smem:[#allocation26_spill]] %s2866_s6 }
   0x5   :  { %2885 = sst [smem:[#allocation27_spill]] %s2868_s8 }
   0x6   :  { %2886 = sst [smem:[#allocation28_spill]] %s2869_s9 }
   0x7   :  { %2887 = sst [smem:[#allocation29_spill]] %s2870_s10 }
   0x8   :  { %2888 = sst [smem:[#allocation30_spill]] %s2871_s11 }
   0x9   :  { %2889 = sst [smem:[#allocation31_spill]] %s2872_s12 }
   0xa   :  { %18 = vsyncpa [#allocation4], 0 }
   0xb   :  { %20 = vsyncpa [#allocation4 + $0x1], 0 }
   0xc   :  { %21 = vsyncpa [#allocation7], 0 }
   0xd   :  { %23 = vsyncpa [#allocation7 + $0x1], 0 }
   0xe   :  { %24 = vsyncpa [#allocation10], 0 }
   0xf   :  { %25 = vsyncpa [#allocation5], 0 }
  0x10   :  { %27 = vsyncpa [#allocation5 + $0x1], 0 }
  0x11   :  { %28 = vsyncpa [#allocation14], 0 }
  0x12   :  { %30 = vsyncpa [#allocation14 + $0x1], 0  ;;  %s2403_s21 = smov 0   ;;  %s2405_s22 = smov 0  }
  0x13   :  { %s2407_s23 = smov 0   ;;  %s2409_s24 = smov 0  }
  0x14   :  { %s2411_s25 = smov 0   ;;  %s2413_s26 = smov 0  }
  0x15 LB: > { %2890 = sst [smem:[#allocation21_spill]] %s2294_s21  ;;  %s2434_s27 = sadd.s32 4294967295, %s2314_s26   ;;  %s2314_s26 = sphi %s2413_s26, %s36_s26   ;;  %s2310_s25 = sphi %s2411_s25, %s2924_s25   ;;  %s2306_s24 = sphi %s2409_s24, %s2923_s24   ;;  %s2302_s23 = sphi %s2407_s23, %s2922_s23   ;;  %s2298_s22 = sphi %s2405_s22, %s2921_s22   ;;  %s2294_s21 = sphi %s2403_s21, %s2920_s21  }
  0x16   : > { %s1744_s28 = sadd.s32 4294967294, %s2314_s26   ;;  %p124_p0 = scmp.ne.s32.totalorder %s2298_s22, %s2294_s21 }
  0x17   : > { %p2877_p1 = scmp.eq.s32.totalorder %s2434_s27, 0  ;;  %p338_p3 = scmp.eq.s32.totalorder %s1744_s28, 1 }
  0x18   : > { %p1745_p5 = scmp.ge.s32.totalorder %s2314_s26, 1  ;;  %p373_p7 = scmp.lt.s32.totalorder %s2314_s26, 3 }
  0x19   : > { %p2443_p4 = por %p2877_p1, %p124_p0  ;;  %p2448_p6 = por %p338_p3, %p124_p0 }
  0x1a   : > { %p2453_p8 = pnand %p1745_p5, %p373_p7  ;;  %s2316_s14 = smov [#allocation8]  }
  0x1b   : > { %s2891_s29 = scalar_select %p2443_p4, 1, 0 }
  0x1c   : > { %s2892_s30 = scalar_select %p2448_p6, 1, 0 }
  0x1d   : > { %s2894_s13 = scalar_select %p2453_p8, 1, 0 }
  0x1e   : > { %2893 = sst [smem:[#allocation22_spill]] %s2892_s30  ;;  %s385_s15 = sshll.u32 %s2316_s14, 4  ;;  %s2457_s15 = int_to_ptr.vmem [resolvable:$true] %s385_s15 }
  0x1f   : > { %p1933_p9 = pneg %p2453_p8  ;;  %s2317_s17 = smov [#allocation9]  }
  0x20   : > { %s407_s18 = sshll.u32 %s2317_s17, 4  ;;  %s2318_s19 = smov [#allocation11]   ;;  %s2468_s18 = int_to_ptr.vmem [resolvable:$true] %s407_s18 }
  0x21   : > { %p2464_p11 = pnand %p1933_p9, %p2877_p1  ;;  %s2470_s20 = sshll.u32 %s2318_s19, 4  ;;  %s422_s20 = int_to_ptr.vmem [resolvable:$true] %s2470_s20 }
  0x22   : > { %s2896_s5 = sld [smem:[#allocation25_spill]] }
  0x23   : > { %p2480_p13 = pneg %p2464_p11 }
  0x28   : > { %s2044_s30 = scalar_lea.hbm %s2896_s5, 256 }
  0x29   : > { %p2045_p12 = scmp.ne.s32.totalorder %s2896_s5, %s2044_s30  ;;  %p2051_p5 = scmp.lt.u32.totalorder %s2044_s30, %s2896_s5 }
  0x2b   : > { %p2047_p0 = pnand %p2480_p13, %p2045_p12 }
  0x2d   : > { %p2048_p3 = pneg %p2047_p0 }
  0x2f   : > { %p2053_p7 = pnand %p2051_p5, %p2048_p3 }
  0x31   : > { %2056 = shalt.err (!%p2053_p7)
}
  0x32   : > { %s2057_s12 = scalar_lea.vmem %s2457_s15, 256  ;;  %p2065_p2 = scmp.lt.s32.totalorder %s2457_s15, %s2457_s15 }
  0x33   : > { %p2058_p9 = scmp.ne.s32.totalorder %s2457_s15, %s2057_s12  ;;  %p2066_p6 = scmp.lt.s32.totalorder %s2057_s12, %s2057_s12 }
  0x35   : > { %p2060_p10 = pnand %p2058_p9, %p2480_p13  ;;  %p2067_p12 = por %p2066_p6, %p2065_p2 }
  0x37   : > { %p2061_p1 = pneg %p2060_p10 }
  0x39   : > { %p2068_p0 = pnand %p2067_p12, %p2061_p1 }
  0x3b   : > { %2071 = shalt.err (!%p2068_p0)
}
  0x3c   : > { %s2319_s21 = smov 128   ;;  %s2320_s30 = smov 8  }
  0x3d   : > { %1936 = dma.hbm_to_vmem [thread:$0]  (!%p2464_p11), %s2896_s5, 256, %s2457_s15, [#allocation7], %s2319_s21, %s2319_s21, %s2320_s30  }
  0x3e   : > { %s2898_s9 = sld [smem:[#allocation28_spill]] }
  0x44   : > { %s2072_s6 = scalar_lea.hbm %s2898_s9, 512 }
  0x45   : > { %p2073_p2 = scmp.ne.s32.totalorder %s2898_s9, %s2072_s6  ;;  %p2079_p10 = scmp.lt.u32.totalorder %s2072_s6, %s2898_s9 }
  0x47   : > { %p2075_p1 = pnand %p2073_p2, %p2480_p13 }
  0x49   : > { %p2076_p6 = pneg %p2075_p1 }
  0x4b   : > { %p2081_p3 = pnand %p2079_p10, %p2076_p6 }
  0x4d   : > { %2084 = shalt.err (!%p2081_p3)
}
  0x4e   : > { %s2085_s15 = scalar_lea.vmem %s2468_s18, 512  ;;  %p2093_p12 = scmp.lt.s32.totalorder %s2468_s18, %s2468_s18 }
  0x4f   : > { %p2086_p5 = scmp.ne.s32.totalorder %s2468_s18, %s2085_s15  ;;  %p2094_p0 = scmp.lt.s32.totalorder %s2085_s15, %s2085_s15 }
  0x51   : > { %p2088_p7 = pnand %p2086_p5, %p2480_p13  ;;  %p2095_p2 = por %p2094_p0, %p2093_p12 }
  0x53   : > { %p2089_p9 = pneg %p2088_p7 }
  0x55   : > { %p2096_p1 = pnand %p2095_p2, %p2089_p9 }
  0x57   : > { %2099 = shalt.err (!%p2096_p1)
}
  0x58   : > { %1939 = dma.hbm_to_vmem [thread:$0]  (!%p2464_p11), %s2898_s9, 512, %s2468_s18, [#allocation10], %s2319_s21, %s2319_s21, %s2320_s30  }
  0x59   : > { %s2899_s10 = sld [smem:[#allocation29_spill]] }
  0x5f   : > { %s2100_s28 = scalar_lea.hbm %s2899_s10, 16 }
  0x60   : > { %p2101_p6 = scmp.ne.s32.totalorder %s2899_s10, %s2100_s28  ;;  %p2107_p5 = scmp.lt.u32.totalorder %s2100_s28, %s2899_s10 }
  0x62   : > { %p2103_p10 = pnand %p2101_p6, %p2480_p13 }
  0x64   : > { %p2104_p3 = pneg %p2103_p10 }
  0x66   : > { %p2109_p7 = pnand %p2107_p5, %p2104_p3 }
  0x68   : > { %2112 = shalt.err (!%p2109_p7)
}
  0x69   : > { %s2113_s15 = scalar_lea.vmem %s422_s20, 16  ;;  %s2120_s18 = scalar_lea.vmem %s422_s20, 32 }
  0x6a   : > { %p2114_p9 = scmp.ne.s32.totalorder %s422_s20, %s2113_s15  ;;  %p2121_p2 = scmp.lt.s32.totalorder %s422_s20, %s422_s20 }
  0x6b   : > { %p2122_p1 = scmp.lt.s32.totalorder %s2120_s18, %s2113_s15 }
  0x6c   : > { %p2116_p12 = pnand %p2114_p9, %p2480_p13 }
  0x6d   : > { %p2123_p4 = por %p2122_p1, %p2121_p2 }
  0x6e   : > { %p2117_p0 = pneg %p2116_p12 }
  0x70   : > { %p2124_p8 = pnand %p2123_p4, %p2117_p0 }
  0x72   : > { %2127 = shalt.err (!%p2124_p8)
}
  0x73   : > { %1942 = dma.hbm_to_vmem [thread:$0]  (!%p2464_p11), %s2899_s10, 16, %s422_s20, [#allocation10]  }
  0x74   : > { %s111_s11 = sadd.s32 1, %s2302_s23  ;;  %s48_s1 = sadd.s32 1, %s2310_s25 }
  0x75   : > { %p118_p4 = scmp.ne.s32.totalorder %s2302_s23, %s2298_s22  ;;  %p50_p8 = scmp.ge.s32.totalorder %s48_s1, 2 }
  0x76   : > { %p119_p13 = scmp.eq.s32.totalorder %s2314_s26, 0  ;;  %p2900_p6 = scmp.eq.s32.totalorder %s2434_s27, 1 }
  0x77   : > { %p1960_p3 = scmp.lt.s32.totalorder %s2314_s26, 2  ;;  %s2926_s1 = smov (%p50_p8, %s48_s1), 0 }
  0x78   : > { %p2550_p10 = por %p2900_p6, %p118_p4  ;;  %p120_p5 = por %p119_p13, %p118_p4 }
  0x79   : > { %s449_s3 = sand.u32 1, %s2302_s23   ;;  %s106_s6 = ssub.s32 %s2310_s25, %s2926_s1 }
  0x7a   : > { %s2901_s16 = scalar_select %p2550_p10, 1, 0 }
  0x7b   : > { %p109_p11 = scmp.eq.s32.totalorder %s106_s6, 0  ;;  %s2560_s20 = sshll.u32 %s449_s3, 3 }
  0x7c   : > { %s1751_s8 = sshll.u32 %s2310_s25, 7  ;;  %s453_s12 = scalar_lea.vmem [#allocation3], %s2560_s20 }
  0x7d   : > { %s2564_s28 = scalar_select %p109_p11, %s2302_s23, %s111_s11  }
  0x7e   : > { %s2569_s19 = scalar_lea.hbm %s2862_s2, %s1751_s8  ;;  %s461_s15 = sshll.u32 %s453_s12, 4  ;;  %s2572_s15 = int_to_ptr.vmem [resolvable:$true] %s461_s15 }
  0x7f   : > { %p2576_p7 = pnand %p1960_p3, %p120_p5  ;;  %s2583_s11 = scalar_lea.hbm %s2864_s4, %s1751_s8 }
  0x80   : > { %s478_s6 = sand.u32 1, %s2314_s26   ;;  %s450_s14 = scalar_lea.sflag [#allocation4], %s449_s3 }
  0x81   : > { %s2128_s17 = scalar_lea.hbm %s2569_s19, 128  ;;  %p2130_p12 = pneg %p2576_p7 }
  0x82   : > { %p2129_p9 = scmp.ne.s32.totalorder %s2569_s19, %s2128_s17  ;;  %s2133_s9 = scalar_lea.hbm %s2862_s2, 256 }
  0x83   : > { %p2134_p1 = scmp.lt.u32.totalorder %s2569_s19, %s2862_s2  ;;  %p2135_p4 = scmp.lt.u32.totalorder %s2133_s9, %s2128_s17 }
  0x84   : > { %p2131_p0 = pnand %p2130_p12, %p2129_p9  ;;  %p2137_p13 = scmp.lt.u32.totalorder %s2128_s17, %s2569_s19 }
  0x85   : > { %p2136_p8 = por %p2135_p4, %p2134_p1 }
  0x86   : > { %p2132_p2 = pneg %p2131_p0 }
  0x87   : > { %p2138_p6 = por %p2137_p13, %p2136_p8 }
  0x89   : > { %p2139_p3 = pnand %p2138_p6, %p2132_p2 }
  0x8b   : > { %2142 = shalt.err (!%p2139_p3)
}
  0x8c   : > { %s2143_s3 = scalar_lea.vmem %s2572_s15, 128  ;;  %s2321_s5 = smov [#allocation3]  }
  0x8d   : > { %p2144_p5 = scmp.ne.s32.totalorder %s2572_s15, %s2143_s3  ;;  %s2148_s8 = sshll.u32 %s2321_s5, 4  ;;  %s2149_s8 = int_to_ptr.vmem [resolvable:$false] %s2148_s8 }
  0x8e   : > { %s2150_s10 = scalar_lea.vmem %s2149_s8, 256  ;;  %p2151_p0 = scmp.lt.s32.totalorder %s2572_s15, %s2149_s8 }
  0x8f   : > { %p2146_p11 = pnand %p2144_p5, %p2130_p12  ;;  %p2152_p1 = scmp.lt.s32.totalorder %s2150_s10, %s2143_s3 }
  0x91   : > { %p2147_p9 = pneg %p2146_p11  ;;  %p2153_p4 = por %p2152_p1, %p2151_p0 }
  0x93   : > { %p2154_p8 = pnand %p2153_p4, %p2147_p9 }
  0x95   : > { %2157 = shalt.err (!%p2154_p8)
}
  0x96   : > { %1946 = dma.hbm_to_vmem [thread:$0]  (!%p2576_p7), %s2569_s19, 128, %s2572_s15, %s450_s14  }
  0x97   : > { %s482_s9 = scalar_lea.vmem [#allocation6], %s2560_s20  ;;  %s479_s17 = scalar_lea.sflag [#allocation7], %s478_s6 }
  0x98   : > { %s490_s30 = sshll.u32 %s482_s9, 4  ;;  %s2158_s12 = scalar_lea.hbm %s2583_s11, 128  ;;  %s491_s30 = int_to_ptr.vmem [resolvable:$true] %s490_s30 }
  0x99   : > { %p2159_p2 = scmp.ne.s32.totalorder %s2583_s11, %s2158_s12  ;;  %s2163_s5 = scalar_lea.hbm %s2864_s4, 256 }
  0x9a   : > { %p2164_p3 = scmp.lt.u32.totalorder %s2583_s11, %s2864_s4  ;;  %p2165_p5 = scmp.lt.u32.totalorder %s2163_s5, %s2158_s12 }
  0x9b   : > { %p2161_p13 = pnand %p2159_p2, %p2130_p12  ;;  %p2167_p9 = scmp.lt.u32.totalorder %s2158_s12, %s2583_s11 }
  0x9c   : > { %p2166_p11 = por %p2165_p5, %p2164_p3 }
  0x9d   : > { %p2162_p6 = pneg %p2161_p13 }
  0x9e   : > { %p2168_p0 = por %p2167_p9, %p2166_p11 }
  0xa0   : > { %p2169_p1 = pnand %p2168_p0, %p2162_p6 }
  0xa2   : > { %2172 = shalt.err (!%p2169_p1)
}
  0xa3   : > { %s2173_s20 = scalar_lea.vmem %s491_s30, 128  ;;  %s2322_s19 = smov [#allocation6]  }
  0xa4   : > { %p2174_p4 = scmp.ne.s32.totalorder %s491_s30, %s2173_s20  ;;  %s2178_s15 = sshll.u32 %s2322_s19, 4  ;;  %s2179_s15 = int_to_ptr.vmem [resolvable:$false] %s2178_s15 }
  0xa5   : > { %s2180_s6 = scalar_lea.vmem %s2179_s15, 256  ;;  %p2181_p13 = scmp.lt.s32.totalorder %s491_s30, %s2179_s15 }
  0xa6   : > { %p2176_p8 = pnand %p2174_p4, %p2130_p12  ;;  %p2182_p10 = scmp.lt.s32.totalorder %s2180_s6, %s2173_s20 }
  0xa8   : > { %p2177_p2 = pneg %p2176_p8  ;;  %p2183_p3 = por %p2182_p10, %p2181_p13 }
  0xaa   : > { %p2184_p5 = pnand %p2183_p3, %p2177_p2 }
  0xac   : > { %2187 = shalt.err (!%p2184_p5)
}
  0xad   : > { %1949 = dma.hbm_to_vmem [thread:$0]  (!%p2576_p7), %s2583_s11, 128, %s491_s30, %s479_s17  }
  0xae   : > { %p2903_p6 = scmp.ne.s32.totalorder %s2894_s13, 0 }
  0xaf   : > { %s2636_s14 = sand.u32 (!%p2903_p6), 1, %s2298_s22   ;;  %p2904_p10 = scmp.ne.s32.totalorder (!%p2903_p6), %s2891_s29, 0 }
  0xb0   : > { %499 = sbr.rel (%p2903_p6) target bundleno = 1020 (0x3fc), region = 64  ;;  %s2639_s9 = sshll.u32 (!%p2903_p6), %s2636_s14, 3 }
  0xb1   : > { %s502_s12 = scalar_lea.sflag (!%p2903_p6), [#allocation4], %s2636_s14  ;;  %s505_s21 = scalar_lea.vmem (!%p2903_p6), [#allocation3], %s2639_s9 }
  0xb7   : > { %2269 = dma.done.wait (%p2904_p10), %s502_s12, 128  }
  0xb8   : > { %2271 = vsyncadd (%p2904_p10), %s502_s12, 4294967168  ;;  %s510_s13 = sand.u32 1, %s2434_s27   ;;  %s514_s11 = scalar_lea.vmem [#allocation6], %s2639_s9 }
  0xb9   : > { %s511_s18 = scalar_lea.sflag [#allocation7], %s510_s13 }
  0xba   : > { %2273 = dma.done.wait (%p2904_p10), %s511_s18, 128  }
  0xbb   : > { %2275 = vsyncadd (%p2904_p10), %s511_s18, 4294967168  ;;  %p2905_p7 = scmp.eq.s32.totalorder %s2434_s27, 0 }
  0xbd   : > { %2277 = dma.done.wait (%p2905_p7), [#allocation7], 256   ;;  %p2906_p12 = pmov %p2905_p7 }
  0xbe   : > { %p2907_p11 = pmov %p2905_p7 }
  0xbf   : > { %2279 = vsyncadd (%p2906_p12), [#allocation7], 4294967040 }
  0xc0   : > { %2281 = dma.done.wait (%p2907_p11), [#allocation10], 528   ;;  %p2908_p9 = pmov %p2905_p7 }
  0xc1   : > { %p595_p0 = scmp.lt.s32.totalorder %s2306_s24, 1  ;;  %v2323_v0 = vmov 0.0|0.0   ;;  %vm2324_vm0 = vmmov 0   ;;  %v2325_v1 = vmov 0.0   ;;  %v615_v2 = vld [vmem:[%s2867_s7] sm:$0xff]  ;;  %v616_v3 = vld [vmem:[%s2867_s7 + $0x8] sm:$0xff]  ;;  %v819_v59 = vlaneseq }
  0xc2   : > { %2283 = vsyncadd (%p2908_p9), [#allocation10], 4294966768  ;;  %1889 = vmatprep.subr.bf16.mxu0 %v2323_v0  ;;  %1827 = vmatprep.mubr.msk.f32.mxu0 %vm2324_vm0, %v2325_v1  ;;  %v617_v4 = vld [vmem:[%s2867_s7 + $0x10] sm:$0xff]  ;;  %v1890_v5 = vpack.c.bf16 %v616_v3, %v615_v2  ;;  %v618_v6 = vld [vmem:[%s2867_s7 + $0x18] sm:$0xff]  ;;  %vm626_vm1 = vcmask 261120   ;;  %s2910_s3 = sld [smem:[#allocation23_spill]] }
  0xc3   : > { %1895 = vmatprep.subr.bf16.mxu1 %v2323_v0  ;;  %1838 = vmatprep.mubr.msk.f32.mxu1 %vm2324_vm0, %v2325_v1  ;;  %s596_s29 = scalar_select %p595_p0, %s2306_s24, 1  ;;  %v1893_v7 = vpack.c.bf16 %v618_v6, %v617_v4  ;;  %v707_v9 = vld [vmem:[#allocation9] sm:$0xff]  ;;  %v708_v10 = vld [vmem:[#allocation9 + $0x8] sm:$0xff]  ;;  %v709_v12 = vld [vmem:[#allocation9 + $0x10] sm:$0xff]  ;;  %v2326_v16 = vmov 2   ;;  %v2327_v18 = vmov 0  }
  0xc4   : > { %1891 = vmatpush3.bf16.msra.mxu0 %v1890_v5  ;;  %v1896_v11 = vpack.c.bf16 %v708_v10, %v707_v9  ;;  %v710_v13 = vld [vmem:[#allocation9 + $0x18] sm:$0xff]  ;;  %v821_v15 = vld [vmem:[#allocation8] sm:$0xff]  ;;  %2033 = vset.pattern.permute.xlu1 %v2326_v16  ;;  %vm830_vm2 = vcmask 130048   ;;  %v2328_v22 = vmov 1   ;;  %s2329_s8 = smov 112   ;;  %v2330_v23 = vmov 3  }
  0xc5   : > { %s2681_s19 = sshll.u32 %s596_s29, 3  ;;  %1892 = vmatprep.subr.bf16.mxu0 %v2323_v0  ;;  %v1899_v14 = vpack.c.bf16 %v710_v13, %v709_v12  ;;  %s2909_s29 = sld [smem:[#allocation24_spill]]  ;;  %2031 = vset.pattern.permute.xlu0 %v2327_v18  ;;  %v822_v19 = vld [vmem:[#allocation8 + $0x8] sm:$0xff]  ;;  %v820_v60 = vand.u32 127, %v819_v59  ;;  %v1768_v61 = vld [vmem:[#allocation11] ss:$0 sm:$0xff] }
  0xc6   : > { %s598_s12 = scalar_lea.vmem %s2860_s0, %s2681_s19  ;;  %1897 = vmatpush3.bf16.msra.mxu1 %v1896_v11  ;;  %v1902_v21 = vpack.c.bf16 %v822_v19, %v821_v15  ;;  %s2331_s10 = smov 96   ;;  %v796_v24 = vld [vmem:[%s505_s21] sm:$0xff]  ;;  %vm916_vm5 = vcmask 64512  }
  0xc7   : > { %v2688_v8 = vld [vmem:[%s598_s12] sm:$0xff]  ;;  %1898 = vmatprep.subr.bf16.mxu1 %v2323_v0  ;;  %s2332_s20 = smov 80   ;;  %s2911_s12 = sld [smem:[#allocation27_spill]]  ;;  %v797_v41 = vmul.f32 0.2, %v796_v24 }
  0xc8   : > { %1894 = vmatpush3.bf16.msra.mxu0 %v1893_v7  ;;  %s605_s5 = scalar_lea.vmem %s2910_s3, %s2681_s19  ;;  %s2912_s18 = sld [smem:[#allocation26_spill]] }
  0xc9   : > { %1901 = vmatprep.subr.bf16.mxu0 %v2323_v0  ;;  %v817_v20 = vld [vmem:[%s605_s5] sm:$0xff]  ;;  %v798_v42 = vmul.f32 %v797_v41, %v797_v41  ;;  %vm810_vm3 = vcmp.lt.f32.partialorder %v797_v41, 1.0  ;;  %s1785_s27 = sshll.u32 %s2306_s24, 7  ;;  %s587_s17 = scalar_lea.vmem [#allocation12], %s2639_s9 }
  0xca   : > { %1900 = vmatpush3.bf16.msra.mxu1 %v1899_v14  ;;  %s1518_s3 = sshll.u32 %s587_s17, 4  ;;  %s1499_s15 = scalar_lea.sflag [#allocation5], %s2636_s14  ;;  %s2776_s3 = int_to_ptr.vmem [resolvable:$true] %s1518_s3 }
  0xcb   : > { %1828 = vmatmul.mubr.msk.f32.vlgmr.msra.gmra.mrb[0].mxu0 %vm626_vm1, %v2688_v8  ;;  %1848 = vmatprep.subr.mxu1 %v2325_v1  ;;  %s612_s30 = scalar_lea.vmem %s2909_s29, %s2681_s19  ;;  %s2333_s19 = smov 124   ;;  %v799_v45 = vmul.f32 %v798_v42, %v798_v42 }
  0xcc   : > { %1845 = vmatprep.mubr.msk.f32.mxu0 %vm2324_vm0, %v2325_v1  ;;  %v818_v17 = vld [vmem:[%s612_s30] sm:$0xff]  ;;  %1903 = vmatpush3.bf16.msra.mxu0 %v1902_v21  ;;  %s2334_s29 = smov 32   ;;  %s2335_s30 = smov 64  }
  0xcd   : > { %1234 = vperm.xlu1 %2033, %v818_v17   ;;  %911 = vperm.xlu0 %2031, %v818_v17   ;;  %v1765_v25 = vld [vmem:[%s2911_s12] ss:$0 sm:$0xff]  ;;  %v800_v46 = vmul.f32 %v799_v45, %v799_v45  ;;  %s2188_s6 = scalar_lea.vmem %s2776_s3, 128  ;;  %p2914_p4 = scmp.ne.s32.totalorder %s2901_s16, 0 }
  0xce   : > { %1904 = vmatprep.subr.bf16.mxu0 %v2323_v0  ;;  %v1770_v15 = vld [vmem:[%s2912_s18] ss:$0 sm:$0xff]  ;;  %p2189_p1 = scmp.ne.s32.totalorder %s2776_s3, %s2188_s6 }
  0xcf   : > { %1846 = vmatmul.mubr.msk.f32.vlgmr.msra.gmra.mrb[2].mxu0 %vm830_vm2, %v817_v20  ;;  %v801_v47 = vmul.f32 %v800_v46, %v797_v41 }
  0xd0   : > { %1906 = vmatpush3.bf16.msra.mxu0 %v1902_v21  ;;  %1857 = vmatprep.mubr.msk.f32.mxu0 %vm2324_vm0, %v2325_v1  ;;  %p2190_p8 = pnand %p2189_p1, %p2914_p4 }
  0xd1   : > { %2032 = vset.pattern.permute.xlu0 %v2328_v22  ;;  %993 = vrot.lane.b32.xlu1 %v817_v20, %s2329_s8  ;;  %v802_v48 = vmul.f32 55.0, %v801_v47  ;;  %v804_v49 = vmul.f32 99.0, %v801_v47  ;;  %v807_v50 = vmul.f32 45.0, %v801_v47 }
  0xd2   : > { %1073 = vperm.xlu0 %2032, %v818_v17   ;;  %2034 = vset.pattern.permute.xlu1 %v2330_v23  ;;  %p2191_p2 = pneg %p2190_p8 }
  0xd3   : > { %1907 = vmatprep.subr.bf16.mxu0 %v2323_v0  ;;  %v803_v51 = vsub.f32 1.0, %v802_v48  ;;  %v805_v52 = vmul.f32 %v804_v49, %v797_v41  ;;  %v808_v53 = vmul.f32 %v807_v50, %v798_v42 }
  0xd5   : > { %1395 = vperm.xlu1 %2034, %v818_v17   ;;  %v806_v54 = vadd.f32 %v805_v52, %v803_v51 }
  0xd6   : > { %1154 = vrot.lane.b32.xlu0 %v817_v20, %s2331_s10 }
  0xd7   : > { %2036 = vset.pattern.permute.xlu0 %v2326_v16  ;;  %v809_v56 = vsub.f32 %v806_v54, %v808_v53 }
  0xd9   : > { %1315 = vrot.lane.b32.xlu1 %v817_v20, %s2332_s20  ;;  %v811_v57 = vsel %vm810_vm3, %v809_v56, 0.0  ;;  %s2913_s20 = sld [smem:[#allocation30_spill]] }
  0xda   : > { %813 = vrot.lane.b32.xlu0 %v796_v24, %s2333_s19  ;;  %2035 = vset.pattern.permute.xlu1 %v2328_v22 }
  0xdf   : > { %s2774_s19 = scalar_lea.hbm %s2913_s20, %s1785_s27 }
 0x14c   : > { %v2719_v34 = vpop.permute.xlu1 %1234  ;;  %v912_v36 = vpop.permute.xlu0 %911 }
 0x14d   : > { %vm913_vm4 = vcmp.eq.s32.totalorder %v912_v36, %v820_v60  ;;  %vm1236_vm7 = vcmp.eq.s32.totalorder %v2719_v34, %v820_v60 }
 0x14e   : > { %v1772_v63 = vsel %vm913_vm4, 1.0, %v2325_v1  ;;  %v1778_v6 = vsel %vm1236_vm7, 1.0, %v2325_v1 }
 0x150   : > { %v994_v35 = vpop.permute.xlu1 %993 }
 0x151   : > { %1858 = vmatmul.mubr.msk.f32.vlgmr.msra.gmra.mrb[4].mxu0 %vm830_vm2, %v994_v35  ;;  %v1074_v37 = vpop.permute.xlu0 %1073 }
 0x152   : > { %1909 = vmatpush3.bf16.msra.mxu0 %v1902_v21  ;;  %1869 = vmatprep.mubr.msk.f32.mxu0 %vm2324_vm0, %v2325_v1  ;;  %vm1075_vm6 = vcmp.eq.s32.totalorder %v1074_v37, %v820_v60 }
 0x153   : > { %1910 = vmatprep.subr.bf16.mxu0 %v2323_v0  ;;  %v1775_v3 = vsel %vm1075_vm6, 1.0, %v2325_v1 }
 0x154   : > { %v2727_v39 = vpop.permute.xlu1 %1395 }
 0x155   : > { %v1155_v38 = vpop.permute.xlu0 %1154  ;;  %vm1397_vm8 = vcmp.eq.s32.totalorder %v2727_v39, %v820_v60 }
 0x156   : > { %1870 = vmatmul.mubr.msk.f32.vlgmr.msra.gmra.mrb[6].mxu0 %vm830_vm2, %v1155_v38  ;;  %v1781_v7 = vsel %vm1397_vm8, 1.0, %v2325_v1 }
 0x157   : > { %1912 = vmatpush3.bf16.msra.mxu0 %v1902_v21  ;;  %1881 = vmatprep.mubr.msk.f32.mxu0 %vm2324_vm0, %v2325_v1 }
 0x158   : > { %v1316_v40 = vpop.permute.xlu1 %1315 }
 0x159   : > { %v814_v55 = vpop.permute.xlu0 %813 }
 0x15a   : > { %1882 = vmatmul.mubr.msk.f32.vlgmr.msra.gmra.mrb[8].mxu0 %vm830_vm2, %v1316_v40  ;;  %v816_v58 = vmul.f32 %v814_v55, %v811_v57 }
 0x15c   : > { %1068 = vperm.xlu1 %2035, %v816_v58   ;;  %1229 = vperm.xlu0 %2036, %v816_v58  }
 0x160   : > { %2037 = vset.pattern.permute.xlu1 %v2330_v23  ;;  %2039 = vset.pattern.permute.xlu0 %v2330_v23 }
 0x161   : > { %1390 = vperm.xlu1 %2037, %v816_v58  }
 0x165   : > { %2038 = vset.pattern.permute.xlu1 %v2327_v18 }
 0x166   : > { %906 = vperm.xlu1 %2038, %v816_v58  }
 0x19e   : > { %v696_v26 = vpop.f32.mrb[0].mxu0 }
 0x19f   : > { %v697_v27 = vadd.f32 %v1765_v25, %v696_v26  ;;  %v1829_v28 = vpop.f32.mrb[1].mxu0 }
 0x1a1   : > { %v1767_v29 = vmul.f32 -1.442695, %v697_v27 }
 0x1a2   : > { %v2733_v43 = vpop.f32.mrb[2].mxu0 }
 0x1a3   : > { %2040 = vpow2.f32 %v1767_v29  ;;  %v1847_v44 = vpop.f32.mrb[3].mxu0  ;;  %v901_v16 = vadd.f32 %v1770_v15, %v2733_v43 }
 0x1ad   : > { %v2041_v30 = vpop.eup %2040 }
 0x1ae   : > { %v703_v31 = vadd.f32 1.0, %v2041_v30 }
 0x1b0   : > { %2042 = vrcp.f32 %v703_v31 }
 0x1ba   : > { %v2043_v32 = vpop.eup %2042 }
 0x1bb   : > { %v706_v33 = vmul.f32 %v2043_v32, %v697_v27 }
 0x1bd   : > { %1839 = vmatmul.mubr.msk.f32.vlgmr.msra.gmra.mrb[0].mxu1 %vm626_vm1, %v706_v33 }
 0x1be   : > { %1850 = vmatprep.mubr.msk.f32.mxu1 %vm2324_vm0, %v2325_v1 }
 0x1db   : > { %v1069_v13 = vpop.permute.xlu1 %1068  ;;  %v1230_v26 = vpop.permute.xlu0 %1229 }
 0x1e0   : > { %v1391_v14 = vpop.permute.xlu1 %1390 }
 0x1e5   : > { %v907_v17 = vpop.permute.xlu1 %906 }
 0x1e6   : > { %v909_v18 = vmul.f32 %v907_v17, %v901_v16 }
 0x224   : > { %v1063_v4 = vpop.f32.mrb[4].mxu0 }
 0x225   : > { %v1859_v5 = vpop.f32.mrb[5].mxu0  ;;  %v1064_v21 = vadd.f32 %v1770_v15, %v1063_v4 }
 0x227   : > { %v1071_v27 = vmul.f32 %v1069_v13, %v1064_v21 }
 0x229   : > { %v1224_v9 = vpop.f32.mrb[6].mxu0 }
 0x22a   : > { %v1871_v10 = vpop.f32.mrb[7].mxu0  ;;  %v1225_v24 = vadd.f32 %v1770_v15, %v1224_v9 }
 0x22c   : > { %v1232_v31 = vmul.f32 %v1230_v26, %v1225_v24 }
 0x22d   : > { %v1385_v11 = vpop.f32.mrb[8].mxu0 }
 0x22e   : > { %v1883_v12 = vpop.f32.mrb[9].mxu0  ;;  %v1386_v34 = vadd.f32 %v1770_v15, %v1385_v11 }
 0x230   : > { %v1393_v40 = vmul.f32 %v1391_v14, %v1386_v34 }
 0x290   : > { %v787_v62 = vpop.f32.mrb[0].mxu1 }
 0x291   : > { %v788_v0 = vadd.f32 %v1768_v61, %v787_v62  ;;  %v1840_v2 = vpop.f32.mrb[1].mxu1 }
 0x293   : > { %791 = vst.msk [vmem:[#allocation2] sm:$0xff] %vm626_vm1, %v788_v0  ;;  %1849 = vmatpush3.msra.mxu1 %v788_v0 }
 0x294   : > { %1851 = vmatmul.mubr.msk.f32.vlgmr.msra.gmra.mrb[2].mxu1 %vm916_vm5, %v1772_v63  ;;  %1860 = vmatprep.subr.mxu1 %v2325_v1 }
 0x295   : > { %1861 = vmatpush3.msra.mxu1 %v788_v0  ;;  %1862 = vmatprep.mubr.msk.f32.mxu1 %vm2324_vm0, %v2325_v1 }
 0x296   : > { %1872 = vmatprep.subr.mxu1 %v2325_v1 }
 0x298   : > { %1863 = vmatmul.mubr.msk.f32.vlgmr.msra.gmra.mrb[4].mxu1 %vm916_vm5, %v1775_v3 }
 0x299   : > { %1873 = vmatpush3.msra.mxu1 %v788_v0  ;;  %1874 = vmatprep.mubr.msk.f32.mxu1 %vm2324_vm0, %v2325_v1 }
 0x29a   : > { %1884 = vmatprep.subr.mxu1 %v2325_v1  ;;  %v793_v19 = vld [vmem:[#allocation2] sm:$0xff] }
 0x29c   : > { %1875 = vmatmul.mubr.msk.f32.vlgmr.msra.gmra.mrb[6].mxu1 %vm916_vm5, %v1778_v6 }
 0x29d   : > { %1885 = vmatpush3.msra.mxu1 %v788_v0  ;;  %1886 = vmatprep.mubr.msk.f32.mxu1 %vm2324_vm0, %v2325_v1 }
 0x2a0   : > { %1887 = vmatmul.mubr.msk.f32.vlgmr.msra.gmra.mrb[8].mxu1 %vm916_vm5, %v1781_v7 }
 0x367   : > { %v986_v20 = vpop.f32.mrb[2].mxu1 }
 0x368   : > { %v990_v1 = vmul.f32 %v986_v20, %v793_v19  ;;  %v1852_v22 = vpop.f32.mrb[3].mxu1 }
 0x36a   : > { %v2762_v23 = vmul.f32 %v990_v1, %v909_v18 }
 0x36b   : > { %v1147_v25 = vpop.f32.mrb[4].mxu1 }
 0x36c   : > { %v1151_v28 = vmul.f32 %v1147_v25, %v793_v19  ;;  %v1864_v29 = vpop.f32.mrb[5].mxu1 }
 0x36e   : > { %v1152_v30 = vmul.f32 %v1151_v28, %v1071_v27 }
 0x36f   : > { %v1308_v32 = vpop.f32.mrb[6].mxu1 }
 0x370   : > { %v1312_v33 = vmul.f32 %v1308_v32, %v793_v19  ;;  %v1876_v35 = vpop.f32.mrb[7].mxu1  ;;  %1480 = vrot.lane.b32.xlu0 %v1152_v30, %s2334_s29  ;;  %v1153_v36 = vadd.f32 %v1152_v30, %v2762_v23 }
 0x372   : > { %v1313_v37 = vmul.f32 %v1312_v33, %v1232_v31 }
 0x373   : > { %v1469_v38 = vpop.f32.mrb[8].mxu1 }
 0x374   : > { %v1314_v39 = vadd.f32 %v1313_v37, %v1153_v36  ;;  %v1473_v41 = vmul.f32 %v1469_v38, %v793_v19  ;;  %v1888_v42 = vpop.f32.mrb[9].mxu1  ;;  %1484 = vrot.lane.b32.xlu1 %v1313_v37, %s2335_s30 }
 0x376   : > { %v1474_v43 = vmul.f32 %v1473_v41, %v1393_v40 }
 0x378   : > { %v1475_v44 = vadd.f32 %v1474_v43, %v1314_v39  ;;  %1488 = vrot.lane.b32.xlu0 %v1474_v43, %s2331_s10  ;;  %s2336_s10 = smov [#allocation12]  }
 0x379   : > { %s2192_s12 = sshll.u32 %s2336_s10, 4  ;;  %s2193_s12 = int_to_ptr.vmem [resolvable:$false] %s2192_s12 }
 0x37a   : > { %v1476_v45 = vadd.f32 %v1475_v44, %v2688_v8  ;;  %s2194_s21 = scalar_lea.vmem %s2193_s12, 256  ;;  %p2195_p13 = scmp.lt.s32.totalorder %s2776_s3, %s2193_s12 }
 0x37b   : > { %p2196_p3 = scmp.lt.s32.totalorder %s2194_s21, %s2188_s6 }
 0x37c   : > { %1477 = vst.msk [vmem:[%s587_s17] sm:$0xff] %vm626_vm1, %v1476_v45 }
 0x37d   : > { %p2197_p5 = por %p2196_p3, %p2195_p13 }
 0x37f   : > { %p2198_p6 = pnand %p2197_p5, %p2191_p2 }
 0x381   : > { %2201 = shalt.err (!%p2198_p6)
}
 0x382   : > { %s2202_s13 = scalar_lea.hbm %s2774_s19, 128  ;;  %s2206_s30 = scalar_lea.hbm %s2913_s20, 256 }
 0x383   : > { %p2203_p10 = scmp.ne.s32.totalorder %s2774_s19, %s2202_s13  ;;  %p2207_p11 = scmp.lt.u32.totalorder %s2774_s19, %s2913_s20 }
 0x384   : > { %p2208_p9 = scmp.lt.u32.totalorder %s2206_s30, %s2202_s13  ;;  %p2210_p1 = scmp.lt.u32.totalorder %s2202_s13, %s2774_s19 }
 0x385   : > { %p2204_p7 = pnand %p2203_p10, %p2914_p4 }
 0x386   : > { %p2209_p0 = por %p2208_p9, %p2207_p11 }
 0x387   : > { %p2205_p12 = pneg %p2204_p7 }
 0x388   : > { %p2211_p8 = por %p2210_p1, %p2209_p0 }
 0x38a   : > { %p2212_p2 = pnand %p2211_p8, %p2205_p12 }
 0x38c   : > { %2215 = shalt.err (!%p2212_p2)
}
 0x38d   : > { %1929 = dma.vmem_to_hbm [thread:$0]  (%p2914_p4), %s2776_s3, 128, %s2774_s19, %s1499_s15   ;;  %vm1492_vm9 = vcmask 523264   ;;  %vm1494_vm10 = vcmask 785408   ;;  %v1478_v48 = vld [vmem:[%s514_s11] sm:$0xff] }
 0x38e   : > { %s594_s8 = scalar_lea.vmem [#allocation13], %s2639_s9  ;;  %s2915_s19 = sld [smem:[#allocation31_spill]] }
 0x38f   : > { %s1532_s6 = sshll.u32 %s594_s8, 4  ;;  %s1504_s12 = scalar_lea.sflag [#allocation14], %s2636_s14  ;;  %s2813_s6 = int_to_ptr.vmem [resolvable:$true] %s1532_s6 }
 0x390   : > { %s2216_s11 = scalar_lea.vmem %s2813_s6, 128  ;;  %s2337_s9 = smov [#allocation13]  }
 0x391   : > { %p2217_p13 = scmp.ne.s32.totalorder %s2813_s6, %s2216_s11  ;;  %s2220_s21 = sshll.u32 %s2337_s9, 4  ;;  %s2221_s21 = int_to_ptr.vmem [resolvable:$false] %s2220_s21 }
 0x392   : > { %s2222_s24 = scalar_lea.vmem %s2221_s21, 256  ;;  %p2223_p6 = scmp.lt.s32.totalorder %s2813_s6, %s2221_s21 }
 0x393   : > { %p2218_p3 = pnand %p2217_p13, %p2914_p4  ;;  %p2224_p10 = scmp.lt.s32.totalorder %s2222_s24, %s2216_s11 }
 0x394   : > { %s2811_s15 = scalar_lea.hbm %s2915_s19, %s1785_s27 }
 0x395   : > { %p2219_p5 = pneg %p2218_p3  ;;  %p2225_p7 = por %p2224_p10, %p2223_p6 }
 0x397   : > { %p2226_p12 = pnand %p2225_p7, %p2219_p5 }
 0x3e2   : > { %v1481_v8 = vpop.permute.xlu0 %1480 }
 0x3e3   : > { %v1491_v47 = vsel %vm626_vm1, %v2762_v23, %v1481_v8 }
 0x3e6   : > { %v1485_v46 = vpop.permute.xlu1 %1484 }
 0x3e7   : > { %v1493_v49 = vsel %vm1492_vm9, %v1491_v47, %v1485_v46 }
 0x3ea   : > { %v1489_v50 = vpop.permute.xlu0 %1488 }
 0x3eb   : > { %v1495_v51 = vsel %vm1494_vm10, %v1493_v49, %v1489_v50 }
 0x3ec   : > { %v1496_v52 = vadd.f32 %v1495_v51, %v1478_v48 }
 0x3ee   : > { %1497 = vst [vmem:[%s594_s8] sm:$0xff] %v1496_v52 }
 0x3ef   : > { %2229 = shalt.err (!%p2226_p12)
}
 0x3f0   : > { %s2230_s14 = scalar_lea.hbm %s2811_s15, 128  ;;  %s2234_s18 = scalar_lea.hbm %s2915_s19, 256 }
 0x3f1   : > { %p2231_p11 = scmp.ne.s32.totalorder %s2811_s15, %s2230_s14  ;;  %p2235_p1 = scmp.lt.u32.totalorder %s2811_s15, %s2915_s19 }
 0x3f2   : > { %p2236_p8 = scmp.lt.u32.totalorder %s2234_s18, %s2230_s14  ;;  %p2238_p13 = scmp.lt.u32.totalorder %s2230_s14, %s2811_s15 }
 0x3f3   : > { %p2232_p9 = pnand %p2231_p11, %p2914_p4 }
 0x3f4   : > { %p2237_p2 = por %p2236_p8, %p2235_p1 }
 0x3f5   : > { %p2233_p0 = pneg %p2232_p9 }
 0x3f6   : > { %p2239_p3 = por %p2238_p13, %p2237_p2 }
 0x3f8   : > { %p2240_p5 = pnand %p2239_p3, %p2233_p0 }
 0x3fa   : > { %2243 = shalt.err (!%p2240_p5)
}
 0x3fb   : > { %1930 = dma.vmem_to_hbm [thread:$0]  (%p2914_p4), %s2813_s6, 128, %s2811_s15, %s1504_s12  }
 0x3fc PF: > { %s2916_s17 = sld [smem:[#allocation21_spill]]  ;;  %s2917_s5 = sld [smem:[#allocation22_spill]] }
 0x3fd   : > { %p2919_p10 = scmp.ge.s32.totalorder %s2314_s26, 2 }
 0x402   : > { %s1544_s8 = sand.u32 1, %s2916_s17   ;;  %p2918_p6 = scmp.ne.s32.totalorder %s2917_s5, 0 }
 0x403   : > { %s1545_s10 = scalar_lea.sflag [#allocation5], %s1544_s8 }
 0x404   : > { %p1951_p7 = pnand %p2919_p10, %p2918_p6 }
 0x406   : > { %2285 = dma.done.wait (!%p1951_p7), %s1545_s10, 128  }
 0x407   : > { %2287 = vsyncadd (!%p1951_p7), %s1545_s10, 4294967168  ;;  %s1554_s3 = scalar_lea.sflag [#allocation14], %s1544_s8 }
 0x408   : > { %2289 = dma.done.wait (!%p1951_p7), %s1554_s3, 128  }
 0x409   : > { %2291 = vsyncadd (!%p1951_p7), %s1554_s3, 4294967168  ;;  %s36_s26 = sadd.s32 1, %s2314_s26   ;;  %s2920_s21 = smov %s2298_s22 }
 0x40a   : > { %p33_p12 = scmp.ge.s32.totalorder %s36_s26, 4   ;;  %s2921_s22 = smov %s2302_s23 }
 0x40b   : > { %s2922_s23 = smov %s2564_s28  ;;  %s2923_s24 = smov %s2310_s25 }
 0x40c   : > { %s2924_s25 = smov %s2926_s1  ;;  %35 = sbr.rel (!%p33_p12) target bundleno = 21 (0x15), region = 162 }
 0x413   :  { %1559 = vsyncpa [#allocation4], 1 }
 0x414   :  { %1561 = vsyncpa [#allocation4 + $0x1], 1 }
 0x415   :  { %1562 = vsyncpa [#allocation7], 1 }
 0x416   :  { %1564 = vsyncpa [#allocation7 + $0x1], 1 }
 0x417   :  { %1565 = vsyncpa [#allocation10], 1 }
 0x418   :  { %1566 = vsyncpa [#allocation5], 1 }
 0x419   :  { %1568 = vsyncpa [#allocation5 + $0x1], 1 }
 0x41a   :  { %1569 = vsyncpa [#allocation14], 1 }
 0x41b   :  { %1571 = vsyncpa [#allocation14 + $0x1], 1 }

</bundles_post_ra>
